<compile_context>
chip_gen: v7x
topology: tpu7x:2x2x1
jax: 0.10.0
libtpu: 0.0.40
codegen_flags: <defaults>
</compile_context>

<pallas_src>
import functools

import jax
import jax.numpy as jnp
from jax.experimental import pallas as pl
from jax.experimental.pallas import tpu as pltpu

_LANE = 128
_MiB = 1024 * 1024
_MAX_C_TILE = 256 * _LANE      # 32768 elems: caps the in-kernel lane-fold unroll
_FOLD_COLS_BELOW = 2048        # fold batch rows into lanes below this row width


def _round_up(x, m):
    return -(-x // m) * m


def _round_down(x, m):
    return (x // m) * m


def _sublane_multiple(itemsize):
    # f32 -> 8, bf16/f16 -> 16, int8/fp8 -> 32 sublane quantum.
    return {1: 32, 2: 16}.get(itemsize, 8)


def _device_block_bytes():
    """Per-input block byte target, picked from the chip's VMEM class."""
    try:
        info = pltpu.get_tpu_info()
        vmem = getattr(info, "vmem_capacity_bytes", None)
        if vmem is not None and vmem <= 80 * _MiB:
            # v7x-class (64 MiB VMEM, 3.2 TB/s HBM): bigger blocks to amortize the
            # ~0.35 us per-grid-step overhead; vmem_limit_bytes is raised below.
            return 8 * _MiB
    except Exception:
        pass
    return 4 * _MiB            # v5e / v6e (128 MiB physical VMEM)


def _fold_narrow_cols(rows, cols):
    """(rows, cols) -> (rows//k, k*cols): free row-major reshape that restores
    lane-dense, contiguous DMA rows when cols = N*3 is small."""
    while cols < _FOLD_COLS_BELOW and rows > 1:
        for p in (2, 3, 5, 7):
            if rows % p == 0 and cols * p <= _MAX_C_TILE:
                rows //= p
                cols *= p
                break
        else:
            break
    return rows, cols


def _choose_tiles(rows, cols, sub_mult, itemsize, block_bytes):
    """Pick a lane-dense block of roughly `block_bytes` per input."""
    target_elems = max(sub_mult * _LANE, block_bytes // max(itemsize, 1))

    # Columns: full width when already lane-aligned and within budget, otherwise
    # a balanced multiple of 128 (the ragged edge block is masked in-kernel).
    if cols < _LANE:
        c_tile = cols
    else:
        c_budget = min(_MAX_C_TILE,
                       max(_LANE, _round_down(target_elems // sub_mult, _LANE)))
        if cols <= c_budget and cols % _LANE == 0:
            c_tile = cols
        else:
            nc = max(pl.cdiv(cols, c_budget), 2 if cols % _LANE else 1)
            c_tile = _round_up(pl.cdiv(cols, nc), _LANE)
            c_tile = max(_LANE, min(c_tile, _round_down(cols, _LANE)))

    # Rows: balanced blocks in sublane-quantum multiples near the byte budget.
    budget_rows = max(1, target_elems // max(c_tile, 1))
    if budget_rows >= rows:
        b_tile = rows
    else:
        nb = pl.cdiv(rows, max(sub_mult, _round_down(budget_rows, sub_mult)))
        b_tile = min(rows, _round_up(pl.cdiv(rows, nb), sub_mult))
    return b_tile, c_tile


def _sanitize_tiles(b_tile, c_tile, rows, cols, sub_mult):
    """Clamp/round tiles so Mosaic's (sublane, 128) tiling rule always holds
    (each of the last two block dims: multiple of its quantum OR the full dim)."""
    b_tile = max(1, min(int(b_tile), rows))
    if b_tile != rows:
        b_tile = min(rows, max(sub_mult, _round_down(b_tile, sub_mult)))
        if b_tile != rows and b_tile % sub_mult != 0:
            b_tile = rows
    c_tile = max(1, min(int(c_tile), cols))
    if c_tile != cols:
        c_tile = min(cols, max(_LANE, _round_down(c_tile, _LANE)))
        if c_tile != cols and c_tile % _LANE != 0:
            c_tile = cols
    return b_tile, c_tile


def _megacore_adjust(b_tile, c_tile, rows, cols, sub_mult):
    """Best-effort: give megacore chips (v7x) >= 2 (and an even number of)
    balanced parallel blocks to shard across the two TensorCores."""
    nb, nc = pl.cdiv(rows, b_tile), pl.cdiv(cols, c_tile)
    total = nb * nc
    if total == 1:
        if rows >= 2 * sub_mult:
            b_tile = min(rows, _round_up(pl.cdiv(rows, 2), sub_mult))
        elif c_tile >= 2 * _LANE:
            c_tile = max(_LANE, _round_down(c_tile // 2, _LANE))
    elif total % 2 == 1 and rows > b_tile:
        b2 = min(rows, _round_up(pl.cdiv(rows, nb + 1), sub_mult))
        if b2 >= 1 and (pl.cdiv(rows, b2) * nc) % 2 == 0:
            b_tile = b2
    return b_tile, c_tile


def _partial_sum_kernel(pred_ref, gt_ref, out_ref, *, loss_type, b_tile, c_tile,
                        rows, cols):
    # Widen on the VPU inside the kernel; accumulate in f32.
    diff = pred_ref[...].astype(jnp.float32) - gt_ref[...].astype(jnp.float32)
    contrib = jnp.abs(diff) if loss_type == "l1" else diff * diff

    # Ragged-edge masks.  STATIC branches: only traced when a tile does not
    # evenly divide; jnp.where selects, so padded garbage never leaks.
    if rows % b_tile != 0:
        i = pl.program_id(0)
        row_ids = i * b_tile + jax.lax.broadcasted_iota(jnp.int32, (b_tile, 1), 0)
        contrib = jnp.where(row_ids < rows, contrib, 0.0)
    if cols % c_tile != 0:
        j = pl.program_id(1)
        col_ids = j * c_tile + jax.lax.broadcasted_iota(jnp.int32, (1, c_tile), 1)
        contrib = jnp.where(col_ids < cols, contrib, 0.0)

    # Lane fold: add the aligned 128-wide lane groups together with static
    # slices (pure VPU vreg adds, no relayout), keeping the output lane-dense.
    if c_tile >= _LANE and c_tile % _LANE == 0:
        acc = contrib[:, 0:_LANE]
        for t in range(1, c_tile // _LANE):
            acc = acc + contrib[:, t * _LANE:(t + 1) * _LANE]
    else:  # tiny (cols < 128) path
        acc = contrib
    # (b_tile, W) -> (1, W): vreg adds + one intra-vreg sublane reduce, then a
    # single unmasked lane-dense store (no per-step scalar vst / strided DMA).
    out_ref[0, 0] = jnp.sum(acc, axis=0, keepdims=True)


@functools.partial(jax.jit, static_argnames=("loss_type", "b_tile", "c_tile"))
def vertices_loss(pred_vertices, gt_vertices, loss_type: str = "l1",
                  b_tile=None, c_tile=None):
    """Pallas TPU equivalent of VerticesLoss.forward (mean L1 or L2)."""
    if loss_type not in ("l1", "l2"):
        raise NotImplementedError("Unsupported loss function")
    assert pred_vertices.shape == gt_vertices.shape

    # Free row-major reshapes: (B, N, 3) -> (B, N*3), then fold rows into lanes
    # while the row width is narrow.
    if pred_vertices.ndim <= 1:
        rows, cols = 1, max(1, int(pred_vertices.size))
    else:
        rows = pred_vertices.shape[0]
        cols = int(pred_vertices.size) // max(rows, 1)
    rows, cols = _fold_narrow_cols(rows, cols)
    n_elem = rows * cols
    if n_elem == 0:
        return jnp.float32(jnp.nan)  # torch mean over empty tensor
    p2 = pred_vertices.reshape(rows, cols)
    g2 = gt_vertices.reshape(rows, cols)

    min_itemsize = min(p2.dtype.itemsize, g2.dtype.itemsize)
    max_itemsize = max(p2.dtype.itemsize, g2.dtype.itemsize)
    sub_mult = _sublane_multiple(min_itemsize)

    block_bytes = _device_block_bytes()
    auto_b, auto_c = _choose_tiles(rows, cols, sub_mult, max_itemsize, block_bytes)
    user_tiles = (b_tile is not None) or (c_tile is not None)
    b_tile = auto_b if b_tile is None else b_tile
    c_tile = auto_c if c_tile is None else c_tile
    b_tile, c_tile = _sanitize_tiles(b_tile, c_tile, rows, cols, sub_mult)
    if not user_tiles:
        b_tile, c_tile = _megacore_adjust(b_tile, c_tile, rows, cols, sub_mult)
        b_tile, c_tile = _sanitize_tiles(b_tile, c_tile, rows, cols, sub_mult)

    nb = pl.cdiv(rows, b_tile)
    nc = pl.cdiv(cols, c_tile)
    out_width = _LANE if (c_tile >= _LANE and c_tile % _LANE == 0) else c_tile

    kernel = functools.partial(
        _partial_sum_kernel, loss_type=loss_type, b_tile=b_tile, c_tile=c_tile,
        rows=rows, cols=cols)

    # 2 inputs x 2 pipeline buffers + headroom; capped safely under v7x's 64 MiB.
    in_block_bytes = b_tile * c_tile * (p2.dtype.itemsize + g2.dtype.itemsize)
    vmem_limit = int(min(56 * _MiB, max(32 * _MiB, 2 * in_block_bytes + 16 * _MiB)))

    cost = pl.CostEstimate(
        flops=3 * n_elem,
        transcendentals=0,
        bytes_accessed=n_elem * (p2.dtype.itemsize + g2.dtype.itemsize)
        + nb * nc * out_width * 4)

    partials = pl.pallas_call(
        kernel,
        out_shape=jax.ShapeDtypeStruct((nb, nc, 1, out_width), jnp.float32),
        grid=(nb, nc),
        in_specs=[
            pl.BlockSpec((b_tile, c_tile), lambda i, j: (i, j)),
            pl.BlockSpec((b_tile, c_tile), lambda i, j: (i, j)),
        ],
        out_specs=pl.BlockSpec((1, 1, 1, out_width), lambda i, j: (i, j, 0, 0)),
        compiler_params=pltpu.CompilerParams(
            dimension_semantics=("parallel", "parallel"),
            vmem_limit_bytes=vmem_limit,
        ),
        cost_estimate=cost,
    )(p2, g2)

    # Tiny cross-block reduction + mean.  Divisor comes from the exact Python
    # integer (no premature f32 rounding of n_elem for n > 2^24).
    return jnp.sum(partials) / float(n_elem)


if __name__ == "__main__":
    key = jax.random.PRNGKey(0)
    k1, k2, k3, k4, k5, k6, k7, k8 = jax.random.split(key, 8)

    def check(pred, gt, loss_type, **tiles):
        out = vertices_loss(pred, gt, loss_type=loss_type, **tiles)
        jax.block_until_ready(out)
        p32, g32 = pred.astype(jnp.float32), gt.astype(jnp.float32)
        ref = (jnp.mean(jnp.abs(p32 - g32)) if loss_type == "l1"
               else jnp.mean((p32 - g32) ** 2))
        assert jnp.allclose(out, ref, atol=1e-6, rtol=1e-5), (loss_type, out, ref)

    # Canonical small case from the module: batch=2, 8 vertices, 3 coords.
    pred = jax.random.normal(k1, (2, 8, 3), dtype=jnp.float32)
    gt = jax.random.normal(k2, (2, 8, 3), dtype=jnp.float32)
    check(pred, gt, "l1")
    check(pred, gt, "l2")

    # Auto-tiled path: row folding + megacore split + ragged column masking.
    pred2 = jax.random.normal(k3, (10, 100, 3), dtype=jnp.float32)
    gt2 = jax.random.normal(k4, (10, 100, 3), dtype=jnp.float32)
    check(pred2, gt2, "l1")
    check(pred2, gt2, "l2")

    # Explicit tiles: multi-block grid with ragged row AND column edges.
    pred3 = jax.random.normal(k5, (20, 700, 3), dtype=jnp.float32)
    gt3 = jax.random.normal(k6, (20, 700, 3), dtype=jnp.float32)
    check(pred3, gt3, "l1", b_tile=8, c_tile=1024)
    check(pred3, gt3, "l2", b_tile=8, c_tile=1024)

    # bf16 inputs: DMA'd at narrow width, widened to f32 on the VPU in-kernel.
    pred4 = jax.random.normal(k7, (16, 1000, 3), dtype=jnp.bfloat16)
    gt4 = jax.random.normal(k8, (16, 1000, 3), dtype=jnp.bfloat16)
    check(pred4, gt4, "l1")

    print("KERNEL_OK")
</pallas_src>

<mosaic_0001>
module attributes {stable_mosaic.version = 11 : i64} {
  func.func @_partial_sum_kernel(%arg0: i32, %arg1: i32, %arg2: memref<1x48xf32, #tpu.memory_space<vmem>>, %arg3: memref<1x48xf32, #tpu.memory_space<vmem>>, %arg4: memref<1x1x1x48xf32, #tpu.memory_space<vmem>>) attributes {dimension_semantics = [#tpu.dimension_semantics<parallel>, #tpu.dimension_semantics<parallel>], iteration_bounds = array<i64: 1, 1>, scalar_prefetch = 0 : i64, scratch_operands = 0 : i64, tpu.core_type = #tpu.core_type<tc>, window_params = [{transform_indices = @transform_0, window_bounds = array<i64: 1, 48>}, {transform_indices = @transform_1, window_bounds = array<i64: 1, 48>}, {transform_indices = @transform_2, window_bounds = array<i64: 1, 1, 1, 48>}]} {
    %c0 = arith.constant 0 : index
    %c0_0 = arith.constant 0 : index
    %0 = vector.load %arg2[%c0, %c0_0] : memref<1x48xf32, #tpu.memory_space<vmem>>, vector<1x48xf32>
    %c0_1 = arith.constant 0 : index
    %c0_2 = arith.constant 0 : index
    %1 = vector.load %arg3[%c0_1, %c0_2] : memref<1x48xf32, #tpu.memory_space<vmem>>, vector<1x48xf32>
    %2 = arith.subf %0, %1 : vector<1x48xf32>
    %3 = math.absf %2 : vector<1x48xf32>
    %cst = arith.constant dense<0.000000e+00> : vector<48xf32>
    %4 = vector.multi_reduction <add>, %3, %cst [0] : vector<1x48xf32> to vector<48xf32>
    %5 = vector.shape_cast %4 : vector<48xf32> to vector<1x48xf32>
    %c0_3 = arith.constant 0 : index
    %c0_4 = arith.constant 0 : index
    %c0_5 = arith.constant 0 : index
    %c0_6 = arith.constant 0 : index
    %6 = vector.load %arg4[%c0_3, %c0_4, %c0_5, %c0_6] : memref<1x1x1x48xf32, #tpu.memory_space<vmem>>, vector<1x1x1x48xf32>
    %7 = vector.shape_cast %6 : vector<1x1x1x48xf32> to vector<1x48xf32>
    %8 = vector.shape_cast %5 : vector<1x48xf32> to vector<1x1x1x48xf32>
    tpu.vector_store %arg4[%c0_3, %c0_4, %c0_5, %c0_6], %8 {strides = array<i32>} : memref<1x1x1x48xf32, #tpu.memory_space<vmem>>, vector<1x1x1x48xf32>,
    return
  }
  func.func @transform_0(%arg0: i32, %arg1: i32) -> (i32, i32) {
    %c0_i32 = arith.constant 0 : i32
    return %arg0, %arg1 : i32, i32
  }
  func.func @transform_1(%arg0: i32, %arg1: i32) -> (i32, i32) {
    %c0_i32 = arith.constant 0 : i32
    return %arg0, %arg1 : i32, i32
  }
  func.func @transform_2(%arg0: i32, %arg1: i32) -> (i32, i32, i32, i32) {
    %c0_i32 = arith.constant 0 : i32
    %c0_i32_0 = arith.constant 0 : i32
    %c0_i32_1 = arith.constant 0 : i32
    return %arg0, %arg1, %c0_i32, %c0_i32_0 : i32, i32, i32, i32
  }
}

</mosaic_0001>

<bundles_post_ra>
// kernel: vertices_loss.1
= control target key start
LH: loop header
LB: loop body
LE: loop exit
PB: predicated region body
PF: predicated region fallthrough
CT: control target
= control target key end

     0   :  { %vm16_vm0 = vcmask 385024   ;;  %s46_s0 = inlined_call_operand.vmem [shape: f32[1,48], index: 0, kind: input, shape index: {}]   ;;  %s47_s1 = inlined_call_operand.vmem [shape: f32[1,48], index: 1, kind: input, shape index: {}]   ;;  %s48_s2 = inlined_call_operand.vmem [shape: f32[1,1,1,48], index: 2, kind: output, shape index: {}]  }
   0x1   :  { %v11_v0 = vld [vmem:[%s46_s0] sm:$0x1] }
   0x2   :  { %v12_v1 = vld [vmem:[%s47_s1] sm:$0x1] }
   0x3   :  { %v13_v2 = vsub.f32 %v11_v0, %v12_v1 }
   0x5   :  { %v14_v3 = vand.u32 2147483647, %v13_v2 }
   0x7   :  { %17 = vst.msk [vmem:[%s48_s2] sm:$0x1] %vm16_vm0, %v14_v3 }

</bundles_post_ra>
